<compile_context>
chip_gen: v7x
topology: tpu7x:2x2x1
jax: 0.10.0
libtpu: 0.0.40
codegen_flags: <defaults>
</compile_context>

<pallas_src>
import numpy as np
import jax
import jax.numpy as jnp
from jax.experimental import pallas as pl
from jax.experimental.pallas import tpu as pltpu

# --- small synthetic config (stand-ins for cfg / ResNet-50 dims) -------------
C_IN = 3              # RGB input channels
H = W = 16            # spatial size
HW = H * W
FEATURE_DIM = 128     # stand-in for backbone.fc.in_features (=2048 for resnet50)
NUM_CLASSES = 16      # stand-in for cfg.DATA.NUM_CLASSES
KSIZE = 3
BN_EPS = 1e-5

K_RAW = KSIZE * KSIZE * C_IN      # 27
K_PAD = 32                        # lane-aligned contraction dim
C_PAD = 128                       # lane-dense classifier output width
MAX_ROWS_PER_STEP = 2048          # caps bf16 patch tile + f32 conv intermediate
                                  # (re-derived for v7x's 64 MiB VMEM)


# ------------------------------ grid planning --------------------------------
def _grid_plan(ntot):
    """Per-generation grid sizing.

    Single-TC chips (v5e/v6e): as few steps as possible (ideally 1).
    v7x-class chips: >= 2 steps and CORE_PARALLEL so both TensorCores work.
    The per-step chunk is capped so chunk*H*W <= MAX_ROWS_PER_STEP.
    """
    try:
        kind = jax.devices()[0].device_kind.lower()
    except Exception:
        kind = ""
    is_v7 = ("v7" in kind) or ("7x" in kind)

    max_chunk = max(1, MAX_ROWS_PER_STEP // HW)
    min_steps = 2 if (is_v7 and ntot >= 2) else 1

    chunk = 1
    for c in range(1, ntot + 1):
        if ntot % c == 0 and c <= max_chunk and ntot // c >= min_steps:
            chunk = c
    num_steps = ntot // chunk

    if is_v7 and num_steps >= 2 and num_steps % 2 == 0:
        sems = (pltpu.CORE_PARALLEL,)     # shard the step axis across both TCs
    elif num_steps > 1:
        sems = ("parallel",)
    else:
        sems = ("arbitrary",)
    return chunk, num_steps, sems


# ------------------------------ wrapper glue ---------------------------------
def _squeeze_keep_batch(x):
    """explanations.squeeze() without ever dropping the batch dimension."""
    new_shape = (x.shape[0],) + tuple(d for d in x.shape[1:] if d != 1)
    return x.reshape(new_shape)


def _im2col_bf16(x_nchw):
    """(N, C, H, W) -> (N, H*W, K_PAD) bf16 3x3 patches (padding=1), zero K-pad fused."""
    n = x_nchw.shape[0]
    x = jnp.transpose(x_nchw, (0, 2, 3, 1)).astype(jnp.bfloat16)   # NCHW -> NHWC
    xp = jnp.pad(x, ((0, 0), (1, 1), (1, 1), (0, 0)))
    cols = [xp[:, kh:kh + H, kw:kw + W, :]
            for kh in range(KSIZE) for kw in range(KSIZE)]
    cols.append(jnp.zeros((n, H, W, K_PAD - K_RAW), jnp.bfloat16))  # fused K-pad
    return jnp.concatenate(cols, axis=-1).reshape(n, HW, K_PAD)


# ------------------------------ fused kernel ---------------------------------
def _advnet_kernel(p_ref, pool_ref, wc_ref, w1_ref, b1_ref, wfc_ref, bfc_ref, o_ref):
    # conv-as-matmul (bf16 operands, f32 accumulate) + ReLU
    conv = jnp.dot(p_ref[...], wc_ref[...],
                   preferred_element_type=jnp.float32)              # (m_step, F)
    conv = jnp.maximum(conv, 0.0).astype(jnp.bfloat16)
    # global average pool as an MXU matmul: pool_ref is block-diagonal 1/HW
    # (exact in bf16) -> no in-kernel reshape, no cross-row VPU reduce, no divide.
    feat = jnp.dot(pool_ref[...], conv,
                   preferred_element_type=jnp.float32)              # (chunk, F)
    # Linear(F, F, bias=False) with eval-mode BN folded in, then ReLU
    h = jnp.dot(feat.astype(jnp.bfloat16), w1_ref[...],
                preferred_element_type=jnp.float32) + b1_ref[...]
    h = jnp.maximum(h, 0.0)
    # classifier into the lane-dense padded slab
    out = jnp.dot(h.astype(jnp.bfloat16), wfc_ref[...],
                  preferred_element_type=jnp.float32) + bfc_ref[...]
    o_ref[...] = out.astype(o_ref.dtype)                            # (chunk, C_PAD)


# ------------------------------ fused forward --------------------------------
def advnet_forward(images, explanations, params):
    """Mirrors ADVNET.forward(images, explanations) -> (input_feat, exp_feat)."""
    explanations = _squeeze_keep_batch(explanations)
    n = images.shape[0]
    assert explanations.shape[0] == n
    ntot = 2 * n

    chunk, num_steps, sems = _grid_plan(ntot)
    m_step = chunk * HW

    # One stacked, lane-padded bf16 patch slab for both branches.
    patches = jnp.concatenate(
        [_im2col_bf16(images), _im2col_bf16(explanations)], axis=0
    ).reshape(ntot * HW, K_PAD)

    # Block-diagonal 1/HW pooling matrix; built with numpy -> compile-time const.
    pool = np.kron(np.eye(chunk, dtype=np.float32),
                   np.full((1, HW), 1.0 / HW, np.float32)).astype(jnp.bfloat16)

    out = pl.pallas_call(
        _advnet_kernel,
        out_shape=jax.ShapeDtypeStruct((num_steps, chunk, C_PAD), jnp.float32),
        grid_spec=pltpu.PrefetchScalarGridSpec(
            num_scalar_prefetch=0,
            grid=(num_steps,),
            in_specs=[
                pl.BlockSpec((m_step, K_PAD), lambda i: (i, 0)),
                pl.BlockSpec((chunk, m_step), lambda i: (0, 0)),
                pl.BlockSpec((K_PAD, FEATURE_DIM), lambda i: (0, 0)),
                pl.BlockSpec((FEATURE_DIM, FEATURE_DIM), lambda i: (0, 0)),
                pl.BlockSpec((1, FEATURE_DIM), lambda i: (0, 0)),
                pl.BlockSpec((FEATURE_DIM, C_PAD), lambda i: (0, 0)),
                pl.BlockSpec((1, C_PAD), lambda i: (0, 0)),
            ],
            out_specs=pl.BlockSpec((pl.Squeezed(), chunk, C_PAD),
                                   lambda i: (i, 0, 0)),
        ),
        compiler_params=pltpu.CompilerParams(
            dimension_semantics=sems,
            vmem_limit_bytes=32 * 1024 * 1024),
    )(patches, pool, params["wconv"], params["w1f"], params["b1f"],
      params["wfc"], params["bfc"])

    logits = out.reshape(ntot, C_PAD)[:, :NUM_CLASSES]
    return logits[:n], logits[n:]


# ------------------------------ parameters -----------------------------------
def init_params(key):
    """Raw (PyTorch-layout) parameters for the reduced ADVNET."""
    k0, k1, k2, k3 = jax.random.split(key, 4)
    # PyTorch conv weight (F, Cin, kh, kw)
    conv_w = jax.random.normal(k0, (FEATURE_DIM, C_IN, KSIZE, KSIZE),
                               jnp.float32) * 0.05
    # projection: Linear(F,F,bias=False) weight stored transposed (in, out)
    w1 = jax.random.normal(k1, (FEATURE_DIM, FEATURE_DIM), jnp.float32) * 0.02
    gamma = jnp.ones((1, FEATURE_DIM), jnp.float32)
    beta = jnp.zeros((1, FEATURE_DIM), jnp.float32)
    running_mean = jnp.zeros((1, FEATURE_DIM), jnp.float32)
    running_var = jnp.ones((1, FEATURE_DIM), jnp.float32)
    # backbone.fc: Linear(F, num_classes), weight stored transposed (in, out)
    wfc = jax.random.normal(k2, (FEATURE_DIM, NUM_CLASSES), jnp.float32) * 0.02
    bfc = jax.random.normal(k3, (1, NUM_CLASSES), jnp.float32) * 0.01
    return dict(conv_w=conv_w, w1=w1, gamma=gamma, beta=beta,
                running_mean=running_mean, running_var=running_var,
                wfc=wfc, bfc=bfc)


def prepare_params(raw):
    """One-time weight preprocessing, hoisted OUT of the per-call forward:
    im2col conv-weight matrix (K-padded, bf16), eval-mode BatchNorm1d folded
    into the bias-free Linear, classifier padded to a lane-dense 128-wide slab."""
    # (F, Cin, kh, kw) -> (kh, kw, cin, F) -> (K_RAW, F) -> pad -> bf16
    conv_w_mat = jnp.transpose(raw["conv_w"], (2, 3, 1, 0)).reshape(K_RAW, FEATURE_DIM)
    wconv = jnp.pad(conv_w_mat, ((0, K_PAD - K_RAW), (0, 0))).astype(jnp.bfloat16)

    # Fold eval-mode BN (Linear -> BN order, as in the module) into the Linear.
    scale = raw["gamma"] * jax.lax.rsqrt(raw["running_var"] + BN_EPS)   # (1, F)
    w1f = (raw["w1"] * scale).astype(jnp.bfloat16)                      # (F, F)
    b1f = raw["beta"] - raw["running_mean"] * scale                     # (1, F) f32

    wfc = jnp.pad(raw["wfc"], ((0, 0), (0, C_PAD - NUM_CLASSES))).astype(jnp.bfloat16)
    bfc = jnp.pad(raw["bfc"], ((0, 0), (0, C_PAD - NUM_CLASSES)))       # f32
    return dict(wconv=wconv, w1f=w1f, b1f=b1f, wfc=wfc, bfc=bfc)


# --------------------------------- main ---------------------------------------
if __name__ == "__main__":
    key = jax.random.PRNGKey(0)
    kp, ki, ke = jax.random.split(key, 3)
    params = prepare_params(init_params(kp))       # done once, outside the forward

    images = jax.random.normal(ki, (2, C_IN, H, W), jnp.float32)
    # extra size-1 dim exercises the batch-safe .squeeze() path
    explanations = jax.random.normal(ke, (2, 1, C_IN, H, W), jnp.float32)

    fwd = jax.jit(advnet_forward)
    input_feat, exp_feat = fwd(images, explanations, params)
    jax.block_until_ready((input_feat, exp_feat))

    assert input_feat.shape == (2, NUM_CLASSES)
    assert exp_feat.shape == (2, NUM_CLASSES)
    assert jnp.all(jnp.isfinite(input_feat)) and jnp.all(jnp.isfinite(exp_feat))
    print("KERNEL_OK")
</pallas_src>

<mosaic_0001>
module attributes {stable_mosaic.version = 11 : i64} {
  func.func @_advnet_kernel(%arg0: i32, %arg1: memref<1024x32xbf16, #tpu.memory_space<vmem>>, %arg2: memref<4x1024xbf16, #tpu.memory_space<vmem>>, %arg3: memref<32x128xbf16, #tpu.memory_space<vmem>>, %arg4: memref<128x128xbf16, #tpu.memory_space<vmem>>, %arg5: memref<1x128xf32, #tpu.memory_space<vmem>>, %arg6: memref<128x128xbf16, #tpu.memory_space<vmem>>, %arg7: memref<1x128xf32, #tpu.memory_space<vmem>>, %arg8: memref<1x4x128xf32, #tpu.memory_space<vmem>>) attributes {dimension_semantics = [#tpu.dimension_semantics<arbitrary>], iteration_bounds = array<i64: 1>, scalar_prefetch = 0 : i64, scratch_operands = 0 : i64, tpu.core_type = #tpu.core_type<tc>, window_params = [{transform_indices = @transform_0, window_bounds = array<i64: 1024, 32>}, {pipeline_mode = #tpu.pipeline_mode<synchronous>, transform_indices = @transform_1, window_bounds = array<i64: 4, 1024>}, {pipeline_mode = #tpu.pipeline_mode<synchronous>, transform_indices = @transform_2, window_bounds = array<i64: 32, 128>}, {pipeline_mode = #tpu.pipeline_mode<synchronous>, transform_indices = @transform_3, window_bounds = array<i64: 128, 128>}, {pipeline_mode = #tpu.pipeline_mode<synchronous>, transform_indices = @transform_4, window_bounds = array<i64: 1, 128>}, {pipeline_mode = #tpu.pipeline_mode<synchronous>, transform_indices = @transform_5, window_bounds = array<i64: 128, 128>}, {pipeline_mode = #tpu.pipeline_mode<synchronous>, transform_indices = @transform_6, window_bounds = array<i64: 1, 128>}, {transform_indices = @transform_7, window_bounds = array<i64: 1, 4, 128>}]} {
    %c0 = arith.constant 0 : index
    %c0_0 = arith.constant 0 : index
    %0 = vector.load %arg1[%c0, %c0_0] : memref<1024x32xbf16, #tpu.memory_space<vmem>>, vector<1024x32xbf16>
    %c0_1 = arith.constant 0 : index
    %c0_2 = arith.constant 0 : index
    %1 = vector.load %arg3[%c0_1, %c0_2] : memref<32x128xbf16, #tpu.memory_space<vmem>>, vector<32x128xbf16>
    %cst = arith.constant dense<0.000000e+00> : vector<1024x128xf32>
    %2 = tpu.matmul %0, %1, %cst {dimension_numbers = #tpu.dot_dimension_numbers<[1], [0], [0], [1], [0, 0, 1, 1], [], []>} : vector<1024x32xbf16>, vector<32x128xbf16>, vector<1024x128xf32> -> vector<1024x128xf32>
    %cst_3 = arith.constant 0.000000e+00 : f32
    %3 = vector.broadcast %cst_3 : f32 to vector<1024x128xf32>
    %4 = arith.maximumf %2, %3 : vector<1024x128xf32>
    %5 = arith.truncf %4 : vector<1024x128xf32> to vector<1024x128xbf16>
    %c0_4 = arith.constant 0 : index
    %c0_5 = arith.constant 0 : index
    %6 = vector.load %arg2[%c0_4, %c0_5] : memref<4x1024xbf16, #tpu.memory_space<vmem>>, vector<4x1024xbf16>
    %cst_6 = arith.constant dense<0.000000e+00> : vector<4x128xf32>
    %7 = tpu.matmul %6, %5, %cst_6 {dimension_numbers = #tpu.dot_dimension_numbers<[1], [0], [0], [1], [0, 0, 1, 1], [], []>} : vector<4x1024xbf16>, vector<1024x128xbf16>, vector<4x128xf32> -> vector<4x128xf32>
    %8 = arith.truncf %7 : vector<4x128xf32> to vector<4x128xbf16>
    %c0_7 = arith.constant 0 : index
    %c0_8 = arith.constant 0 : index
    %9 = vector.load %arg4[%c0_7, %c0_8] : memref<128x128xbf16, #tpu.memory_space<vmem>>, vector<128x128xbf16>
    %cst_9 = arith.constant dense<0.000000e+00> : vector<4x128xf32>
    %10 = tpu.matmul %8, %9, %cst_9 {dimension_numbers = #tpu.dot_dimension_numbers<[1], [0], [0], [1], [0, 0, 1, 1], [], []>} : vector<4x128xbf16>, vector<128x128xbf16>, vector<4x128xf32> -> vector<4x128xf32>
    %c0_10 = arith.constant 0 : index
    %c0_11 = arith.constant 0 : index
    %11 = vector.load %arg5[%c0_10, %c0_11] : memref<1x128xf32, #tpu.memory_space<vmem>>, vector<1x128xf32>
    %12 = vector.broadcast %11 : vector<1x128xf32> to vector<4x128xf32>
    %13 = arith.addf %10, %12 : vector<4x128xf32>
    %cst_12 = arith.constant 0.000000e+00 : f32
    %14 = vector.broadcast %cst_12 : f32 to vector<4x128xf32>
    %15 = arith.maximumf %13, %14 : vector<4x128xf32>
    %16 = arith.truncf %15 : vector<4x128xf32> to vector<4x128xbf16>
    %c0_13 = arith.constant 0 : index
    %c0_14 = arith.constant 0 : index
    %17 = vector.load %arg6[%c0_13, %c0_14] : memref<128x128xbf16, #tpu.memory_space<vmem>>, vector<128x128xbf16>
    %cst_15 = arith.constant dense<0.000000e+00> : vector<4x128xf32>
    %18 = tpu.matmul %16, %17, %cst_15 {dimension_numbers = #tpu.dot_dimension_numbers<[1], [0], [0], [1], [0, 0, 1, 1], [], []>} : vector<4x128xbf16>, vector<128x128xbf16>, vector<4x128xf32> -> vector<4x128xf32>
    %c0_16 = arith.constant 0 : index
    %c0_17 = arith.constant 0 : index
    %19 = vector.load %arg7[%c0_16, %c0_17] : memref<1x128xf32, #tpu.memory_space<vmem>>, vector<1x128xf32>
    %20 = vector.broadcast %19 : vector<1x128xf32> to vector<4x128xf32>
    %21 = arith.addf %18, %20 : vector<4x128xf32>
    %c0_18 = arith.constant 0 : index
    %c0_19 = arith.constant 0 : index
    %c0_20 = arith.constant 0 : index
    %22 = vector.load %arg8[%c0_18, %c0_19, %c0_20] : memref<1x4x128xf32, #tpu.memory_space<vmem>>, vector<1x4x128xf32>
    %23 = vector.shape_cast %22 : vector<1x4x128xf32> to vector<4x128xf32>
    %24 = vector.shape_cast %21 : vector<4x128xf32> to vector<1x4x128xf32>
    tpu.vector_store %arg8[%c0_18, %c0_19, %c0_20], %24 {strides = array<i32>} : memref<1x4x128xf32, #tpu.memory_space<vmem>>, vector<1x4x128xf32>,
    return
  }
  func.func @transform_0(%arg0: i32) -> (i32, i32) {
    %c0_i32 = arith.constant 0 : i32
    %c0_i32_0 = arith.constant 0 : i32
    return %arg0, %c0_i32 : i32, i32
  }
  func.func @transform_1(%arg0: i32) -> (i32, i32) {
    %c0_i32 = arith.constant 0 : i32
    %c0_i32_0 = arith.constant 0 : i32
    %c0_i32_1 = arith.constant 0 : i32
    return %c0_i32, %c0_i32_0 : i32, i32
  }
  func.func @transform_2(%arg0: i32) -> (i32, i32) {
    %c0_i32 = arith.constant 0 : i32
    %c0_i32_0 = arith.constant 0 : i32
    %c0_i32_1 = arith.constant 0 : i32
    return %c0_i32, %c0_i32_0 : i32, i32
  }
  func.func @transform_3(%arg0: i32) -> (i32, i32) {
    %c0_i32 = arith.constant 0 : i32
    %c0_i32_0 = arith.constant 0 : i32
    %c0_i32_1 = arith.constant 0 : i32
    return %c0_i32, %c0_i32_0 : i32, i32
  }
  func.func @transform_4(%arg0: i32) -> (i32, i32) {
    %c0_i32 = arith.constant 0 : i32
    %c0_i32_0 = arith.constant 0 : i32
    %c0_i32_1 = arith.constant 0 : i32
    return %c0_i32, %c0_i32_0 : i32, i32
  }
  func.func @transform_5(%arg0: i32) -> (i32, i32) {
    %c0_i32 = arith.constant 0 : i32
    %c0_i32_0 = arith.constant 0 : i32
    %c0_i32_1 = arith.constant 0 : i32
    return %c0_i32, %c0_i32_0 : i32, i32
  }
  func.func @transform_6(%arg0: i32) -> (i32, i32) {
    %c0_i32 = arith.constant 0 : i32
    %c0_i32_0 = arith.constant 0 : i32
    %c0_i32_1 = arith.constant 0 : i32
    return %c0_i32, %c0_i32_0 : i32, i32
  }
  func.func @transform_7(%arg0: i32) -> (i32, i32, i32) {
    %c0_i32 = arith.constant 0 : i32
    %c0_i32_0 = arith.constant 0 : i32
    %c0_i32_1 = arith.constant 0 : i32
    return %arg0, %c0_i32, %c0_i32_0 : i32, i32, i32
  }
}

</mosaic_0001>

<bundles_post_ra>
// kernel: advnet_forward.1
= control target key start
LH: loop header
LB: loop body
LE: loop exit
PB: predicated region body
PF: predicated region fallthrough
CT: control target
= control target key end

     0   :  { %vm491_vm0 = vcmask 261120   ;;  %v2440_v59 = vmov 1983009808   ;;  %v1429_v61 = vlaneseq  ;;  %vm2442_vm1 = vmmov 0   ;;  %s2919_s2 = inlined_call_operand.vmem [shape: bf16[32,128], index: 2, kind: input, shape index: {}]   ;;  %s2920_s0 = inlined_call_operand.vmem [shape: bf16[1024,32], index: 0, kind: input, shape index: {}]   ;;  %s2921_s1 = inlined_call_operand.vmem [shape: bf16[4,1024], index: 1, kind: input, shape index: {}]   ;;  %s2922_s3 = inlined_call_operand.vmem [shape: bf16[128,128], index: 3, kind: input, shape index: {}]   ;;  %s2923_s5 = inlined_call_operand.vmem [shape: bf16[128,128], index: 5, kind: input, shape index: {}]   ;;  %s2924_s4 = inlined_call_operand.vmem [shape: f32[1,128], index: 4, kind: input, shape index: {}]   ;;  %s2925_s6 = inlined_call_operand.vmem [shape: f32[1,128], index: 6, kind: input, shape index: {}]   ;;  %s2926_s7 = inlined_call_operand.vmem [shape: f32[1,4,128], index: 7, kind: output, shape index: {}]  }
   0x1   :  { %v2356_v0 = vld [vmem:[%s2919_s2] sm:$0xff]   ;;  %v2357_v1 = vld [vmem:[%s2919_s2 + $0x8] sm:$0xff]   ;;  %v2360_v4 = vld [vmem:[%s2920_s0 + $0x10] sm:$0xff]   ;;  %v1427_v60 = vunpack.c.l.s4 %v2440_v59 }
   0x2   :  { %2177 = vmatprep.subr.bf16.mxu0 %v2356_v0  ;;  %v2358_v2 = vld [vmem:[%s2920_s0] sm:$0xff]   ;;  %2349 = vmatprep.subr.bf16.mxu1 %v2356_v0  ;;  %v2359_v3 = vld [vmem:[%s2920_s0 + $0x8] sm:$0xff]   ;;  %v2361_v5 = vld [vmem:[%s2920_s0 + $0x18] sm:$0xff]   ;;  %v1430_v63 = vshrl.u32 %v1429_v61, 7 }
   0x3   :  { %2178 = vmatpush3.bf16.msra.mxu0 %v2356_v0  ;;  %2351 = vmatpush3.bf16.msra.mxu1 %v2356_v0  ;;  %v2362_v6 = vld [vmem:[%s2920_s0 + $0x20] sm:$0xff]   ;;  %v2363_v7 = vld [vmem:[%s2920_s0 + $0x28] sm:$0xff]   ;;  %v2364_v8 = vld [vmem:[%s2920_s0 + $0x30] sm:$0xff]   ;;  %v1428_v62 = vunpack.c.0.s8 %v1427_v60 }
   0x4   :  { %2179 = vmatprep.subr.bf16.mxu0 %v2357_v1  ;;  %2181 = vmatprep.mubr.msk.bf16.mxu0 %vm491_vm0, %v2358_v2  ;;  %v2365_v9 = vld [vmem:[%s2920_s0 + $0x38] sm:$0xff]   ;;  %v2366_v10 = vld [vmem:[%s2920_s0 + $0x40] sm:$0xff]   ;;  %v2367_v11 = vld [vmem:[%s2920_s0 + $0x48] sm:$0xff]  }
   0x5   :  { %2350 = vmatprep.subr.bf16.mxu1 %v2357_v1  ;;  %v2368_v12 = vld [vmem:[%s2920_s0 + $0x50] sm:$0xff]   ;;  %v2369_v13 = vld [vmem:[%s2920_s0 + $0x58] sm:$0xff]   ;;  %v2370_v14 = vld [vmem:[%s2920_s0 + $0x60] sm:$0xff]   ;;  %v2723_v2 = vsub.s32 %v1428_v62, %v1430_v63 }
   0x6   :  { %v2371_v15 = vld [vmem:[%s2920_s0 + $0x68] sm:$0xff]   ;;  %v2372_v16 = vld [vmem:[%s2920_s0 + $0x70] sm:$0xff]   ;;  %v2405_v18 = vld [vmem:[%s2920_s0 + $0x1b8] sm:$0xff]  }
   0x7   :  { %2180 = vmatpush3.bf16.msra.mxu0 %v2357_v1  ;;  %2352 = vmatpush3.bf16.msra.mxu1 %v2357_v1  ;;  %v2404_v17 = vld [vmem:[%s2920_s0 + $0x1b0] sm:$0xff]   ;;  %v2373_v19 = vld [vmem:[%s2920_s0 + $0x78] sm:$0xff]   ;;  %v2374_v20 = vld [vmem:[%s2920_s0 + $0x80] sm:$0xff]  }
   0x8   :  { %2289 = vmatprep.mubr.msk.bf16.mxu1 %vm491_vm0, %v2404_v17  ;;  %v2408_v21 = vld [vmem:[%s2920_s0 + $0x1c0] sm:$0xff]   ;;  %v2409_v22 = vld [vmem:[%s2920_s0 + $0x1c8] sm:$0xff]   ;;  %v2376_v24 = vld [vmem:[%s2920_s0 + $0x90] sm:$0xff]  }
   0x9   :  { %v2375_v23 = vld [vmem:[%s2920_s0 + $0x88] sm:$0xff]   ;;  %v2412_v25 = vld [vmem:[%s2920_s0 + $0x1d0] sm:$0xff]   ;;  %v2413_v26 = vld [vmem:[%s2920_s0 + $0x1d8] sm:$0xff]  }
   0xa   :  { %2182 = vmatmul.mubr.msk.bf16.vlgmr.msra.gmra.mrb[0].mxu0 %vm491_vm0, %v2359_v3  ;;  %2290 = vmatmul.mubr.msk.bf16.vlgmr.msra.gmra.mrb[0].mxu1 %vm491_vm0, %v2405_v18  ;;  %v2377_v27 = vld [vmem:[%s2920_s0 + $0x98] sm:$0xff]   ;;  %v2378_v28 = vld [vmem:[%s2920_s0 + $0xa0] sm:$0xff]   ;;  %v2417_v30 = vld [vmem:[%s2920_s0 + $0x1e8] sm:$0xff]  }
   0xb   :  { %2185 = vmatprep.mubr.msk.bf16.mxu0 %vm491_vm0, %v2360_v4  ;;  %2293 = vmatprep.mubr.msk.bf16.mxu1 %vm491_vm0, %v2408_v21  ;;  %v2416_v29 = vld [vmem:[%s2920_s0 + $0x1e0] sm:$0xff]   ;;  %v2379_v31 = vld [vmem:[%s2920_s0 + $0xa8] sm:$0xff]   ;;  %v2380_v32 = vld [vmem:[%s2920_s0 + $0xb0] sm:$0xff]  }
   0xc   :  { %v2420_v33 = vld [vmem:[%s2920_s0 + $0x1f0] sm:$0xff]   ;;  %v2421_v34 = vld [vmem:[%s2920_s0 + $0x1f8] sm:$0xff]   ;;  %v2382_v36 = vld [vmem:[%s2920_s0 + $0xc0] sm:$0xff]  }
   0xd   :  { %v2381_v35 = vld [vmem:[%s2920_s0 + $0xb8] sm:$0xff]   ;;  %v2383_v37 = vld [vmem:[%s2920_s0 + $0xc8] sm:$0xff]   ;;  %v2384_v38 = vld [vmem:[%s2920_s0 + $0xd0] sm:$0xff]  }
   0xe   :  { %v2385_v39 = vld [vmem:[%s2920_s0 + $0xd8] sm:$0xff]   ;;  %v2386_v40 = vld [vmem:[%s2920_s0 + $0xe0] sm:$0xff]   ;;  %v2387_v41 = vld [vmem:[%s2920_s0 + $0xe8] sm:$0xff]  }
   0xf   :  { %v2388_v42 = vld [vmem:[%s2920_s0 + $0xf0] sm:$0xff]   ;;  %v2389_v43 = vld [vmem:[%s2920_s0 + $0xf8] sm:$0xff]   ;;  %v2390_v44 = vld [vmem:[%s2920_s0 + $0x100] sm:$0xff]  }
  0x10   :  { %v2391_v45 = vld [vmem:[%s2920_s0 + $0x108] sm:$0xff]   ;;  %v2392_v46 = vld [vmem:[%s2920_s0 + $0x110] sm:$0xff]   ;;  %v2393_v47 = vld [vmem:[%s2920_s0 + $0x118] sm:$0xff]  }
  0x11   :  { %v2394_v48 = vld [vmem:[%s2920_s0 + $0x120] sm:$0xff]   ;;  %v2395_v49 = vld [vmem:[%s2920_s0 + $0x128] sm:$0xff]   ;;  %v2396_v50 = vld [vmem:[%s2920_s0 + $0x130] sm:$0xff]  }
  0x12   :  { %2186 = vmatmul.mubr.msk.bf16.gmra.mrb[4].mxu0 %vm491_vm0, %v2361_v5  ;;  %2294 = vmatmul.mubr.msk.bf16.gmra.mrb[4].mxu1 %vm491_vm0, %v2409_v22  ;;  %v2397_v51 = vld [vmem:[%s2920_s0 + $0x138] sm:$0xff]   ;;  %v2398_v52 = vld [vmem:[%s2920_s0 + $0x140] sm:$0xff]   ;;  %v2399_v53 = vld [vmem:[%s2920_s0 + $0x148] sm:$0xff]  }
  0x13   :  { %2189 = vmatprep.mubr.msk.bf16.mxu0 %vm491_vm0, %v2362_v6  ;;  %2297 = vmatprep.mubr.msk.bf16.mxu1 %vm491_vm0, %v2412_v25  ;;  %v2400_v54 = vld [vmem:[%s2920_s0 + $0x150] sm:$0xff]   ;;  %v2401_v55 = vld [vmem:[%s2920_s0 + $0x158] sm:$0xff]   ;;  %v2402_v56 = vld [vmem:[%s2920_s0 + $0x160] sm:$0xff]  }
  0x14   :  { %v2403_v57 = vld [vmem:[%s2920_s0 + $0x168] sm:$0xff]   ;;  %v2406_v58 = vld [vmem:[%s2920_s0 + $0x170] sm:$0xff]   ;;  %v2407_v0 = vld [vmem:[%s2920_s0 + $0x178] sm:$0xff]  }
  0x15   :  { %v2410_v1 = vld [vmem:[%s2920_s0 + $0x180] sm:$0xff]   ;;  %v2411_v6 = vld [vmem:[%s2920_s0 + $0x188] sm:$0xff]  }
  0x16   :  { %v2728_v3 = vld [vmem:[%s2921_s1] sm:$0xff] }
  0x17   :  { %v2732_v4 = vrot.slane %v2728_v3, %v2723_v2 }
  0x19   :  { %v1440_v5 = vcombine.high %v2732_v4, %v2732_v4 }
  0x1a   :  { %2190 = vmatmul.mubr.msk.bf16.gmra.mrb[8].mxu0 %vm491_vm0, %v2363_v7  ;;  %2298 = vmatmul.mubr.msk.bf16.gmra.mrb[8].mxu1 %vm491_vm0, %v2413_v26  ;;  %v2414_v7 = vld [vmem:[%s2920_s0 + $0x190] sm:$0xff]  }
  0x1b   :  { %2193 = vmatprep.mubr.msk.bf16.mxu0 %vm491_vm0, %v2364_v8  ;;  %2301 = vmatprep.mubr.msk.bf16.mxu1 %vm491_vm0, %v2416_v29  ;;  %v2415_v8 = vld [vmem:[%s2920_s0 + $0x198] sm:$0xff]  }
  0x22   :  { %2194 = vmatmul.mubr.msk.bf16.gmra.mrb[12].mxu0 %vm491_vm0, %v2365_v9  ;;  %2302 = vmatmul.mubr.msk.bf16.gmra.mrb[12].mxu1 %vm491_vm0, %v2417_v30  ;;  %v2418_v9 = vld [vmem:[%s2920_s0 + $0x1a0] sm:$0xff]  }
  0x23   :  { %2197 = vmatprep.mubr.msk.bf16.mxu0 %vm491_vm0, %v2366_v10  ;;  %2305 = vmatprep.mubr.msk.bf16.mxu1 %vm491_vm0, %v2420_v33  ;;  %v2419_v10 = vld [vmem:[%s2920_s0 + $0x1a8] sm:$0xff]  }
  0x2a   :  { %2198 = vmatmul.mubr.msk.bf16.gmra.mrb[16].mxu0 %vm491_vm0, %v2367_v11  ;;  %2306 = vmatmul.mubr.msk.bf16.gmra.mrb[16].mxu1 %vm491_vm0, %v2421_v34 }
  0x2b   :  { %2201 = vmatprep.mubr.msk.bf16.mxu0 %vm491_vm0, %v2368_v12  ;;  %1499 = vmatprep.mubr.bf16.mxu1 %v1440_v5 }
  0x32   :  { %2202 = vmatmul.mubr.msk.bf16.gmra.mrb[20].mxu0 %vm491_vm0, %v2369_v13 }
  0x33   :  { %2205 = vmatprep.mubr.msk.bf16.mxu0 %vm491_vm0, %v2370_v14 }
  0x3a   :  { %2206 = vmatmul.mubr.msk.bf16.gmra.mrb[24].mxu0 %vm491_vm0, %v2371_v15 }
  0x3b   :  { %2209 = vmatprep.mubr.msk.bf16.mxu0 %vm491_vm0, %v2372_v16 }
  0x42   :  { %2210 = vmatmul.mubr.msk.bf16.gmra.mrb[28].mxu0 %vm491_vm0, %v2373_v19 }
  0x43   :  { %2213 = vmatprep.mubr.msk.bf16.mxu0 %vm491_vm0, %v2374_v20 }
  0x4a   :  { %2214 = vmatmul.mubr.msk.bf16.gmra.mrb[32].mxu0 %vm491_vm0, %v2375_v23 }
  0x4b   :  { %2217 = vmatprep.mubr.msk.bf16.mxu0 %vm491_vm0, %v2376_v24 }
  0x52   :  { %2218 = vmatmul.mubr.msk.bf16.gmra.mrb[36].mxu0 %vm491_vm0, %v2377_v27 }
  0x53   :  { %2221 = vmatprep.mubr.msk.bf16.mxu0 %vm491_vm0, %v2378_v28 }
  0x5a   :  { %2222 = vmatmul.mubr.msk.bf16.gmra.mrb[40].mxu0 %vm491_vm0, %v2379_v31 }
  0x5b   :  { %2225 = vmatprep.mubr.msk.bf16.mxu0 %vm491_vm0, %v2380_v32 }
  0x62   :  { %2226 = vmatmul.mubr.msk.bf16.gmra.mrb[44].mxu0 %vm491_vm0, %v2381_v35 }
  0x63   :  { %2229 = vmatprep.mubr.msk.bf16.mxu0 %vm491_vm0, %v2382_v36 }
  0x6a   :  { %2230 = vmatmul.mubr.msk.bf16.gmra.mrb[48].mxu0 %vm491_vm0, %v2383_v37 }
  0x6b   :  { %2233 = vmatprep.mubr.msk.bf16.mxu0 %vm491_vm0, %v2384_v38 }
  0x72   :  { %2234 = vmatmul.mubr.msk.bf16.gmra.mrb[52].mxu0 %vm491_vm0, %v2385_v39 }
  0x73   :  { %2237 = vmatprep.mubr.msk.bf16.mxu0 %vm491_vm0, %v2386_v40 }
  0x7a   :  { %2238 = vmatmul.mubr.msk.bf16.gmra.mrb[56].mxu0 %vm491_vm0, %v2387_v41 }
  0x7b   :  { %2241 = vmatprep.mubr.msk.bf16.mxu0 %vm491_vm0, %v2388_v42 }
  0x82   :  { %2242 = vmatmul.mubr.msk.bf16.gmra.mrb[60].mxu0 %vm491_vm0, %v2389_v43 }
  0x83   :  { %2245 = vmatprep.mubr.msk.bf16.mxu0 %vm491_vm0, %v2390_v44 }
  0x8a   :  { %2246 = vmatmul.mubr.msk.bf16.gmra.mrb[64].mxu0 %vm491_vm0, %v2391_v45 }
  0x8b   :  { %2249 = vmatprep.mubr.msk.bf16.mxu0 %vm491_vm0, %v2392_v46 }
  0x92   :  { %2250 = vmatmul.mubr.msk.bf16.gmra.mrb[68].mxu0 %vm491_vm0, %v2393_v47 }
  0x93   :  { %2253 = vmatprep.mubr.msk.bf16.mxu0 %vm491_vm0, %v2394_v48 }
  0x9a   :  { %2254 = vmatmul.mubr.msk.bf16.gmra.mrb[72].mxu0 %vm491_vm0, %v2395_v49 }
  0x9b   :  { %2257 = vmatprep.mubr.msk.bf16.mxu0 %vm491_vm0, %v2396_v50 }
  0xa2   :  { %2258 = vmatmul.mubr.msk.bf16.gmra.mrb[76].mxu0 %vm491_vm0, %v2397_v51 }
  0xa3   :  { %2261 = vmatprep.mubr.msk.bf16.mxu0 %vm491_vm0, %v2398_v52 }
  0xaa   :  { %2262 = vmatmul.mubr.msk.bf16.gmra.mrb[80].mxu0 %vm491_vm0, %v2399_v53 }
  0xab   :  { %2265 = vmatprep.mubr.msk.bf16.mxu0 %vm491_vm0, %v2400_v54 }
  0xb2   :  { %2266 = vmatmul.mubr.msk.bf16.gmra.mrb[84].mxu0 %vm491_vm0, %v2401_v55 }
  0xb3   :  { %2269 = vmatprep.mubr.msk.bf16.mxu0 %vm491_vm0, %v2402_v56 }
  0xba   :  { %2270 = vmatmul.mubr.msk.bf16.gmra.mrb[88].mxu0 %vm491_vm0, %v2403_v57 }
  0xbb   :  { %2273 = vmatprep.mubr.msk.bf16.mxu0 %vm491_vm0, %v2406_v58 }
  0xc2   :  { %2274 = vmatmul.mubr.msk.bf16.gmra.mrb[92].mxu0 %vm491_vm0, %v2407_v0 }
  0xc3   :  { %2277 = vmatprep.mubr.msk.bf16.mxu0 %vm491_vm0, %v2410_v1 }
  0xca   :  { %2278 = vmatmul.mubr.msk.bf16.gmra.mrb[96].mxu0 %vm491_vm0, %v2411_v6 }
  0xcb   :  { %2281 = vmatprep.mubr.msk.bf16.mxu0 %vm491_vm0, %v2414_v7 }
  0xd2   :  { %2282 = vmatmul.mubr.msk.bf16.gmra.mrb[100].mxu0 %vm491_vm0, %v2415_v8 }
  0xd3   :  { %2285 = vmatprep.mubr.msk.bf16.mxu0 %vm491_vm0, %v2418_v9 }
  0xda   :  { %2286 = vmatmul.mubr.msk.bf16.gmra.mrb[104].mxu0 %vm491_vm0, %v2419_v10 }
  0xdd   :  { %v2183_v11 = vpop.f32.mrb[0].mxu0 }
  0xde   :  { %v718_v12 = vpop.f32.mrb[1].mxu0  ;;  %v1231_v14 = vmax.f32 %v2183_v11, 0.0 }
  0xdf   :  { %v2184_v13 = vpop.f32.mrb[2].mxu0  ;;  %v1229_v17 = vmax.f32 %v718_v12, 0.0 }
  0xe0   :  { %v1232_v15 = vmax.f32 %v2184_v13, 0.0  ;;  %v721_v16 = vpop.f32.mrb[3].mxu0 }
  0xe1   :  { %v1230_v18 = vmax.f32 %v721_v16, 0.0 }
  0xe2   :  { %v1358_v19 = vpack.c.bf16 %v1232_v15, %v1231_v14 }
  0xe3   :  { %v1357_v20 = vpack.c.bf16 %v1230_v18, %v1229_v17 }
  0xe5   :  { %v2187_v21 = vpop.f32.mrb[4].mxu0 }
  0xe6   :  { %v734_v22 = vpop.f32.mrb[5].mxu0  ;;  %v1235_v24 = vmax.f32 %v2187_v21, 0.0 }
  0xe7   :  { %v2188_v23 = vpop.f32.mrb[6].mxu0  ;;  %v1233_v27 = vmax.f32 %v734_v22, 0.0 }
  0xe8   :  { %v1236_v25 = vmax.f32 %v2188_v23, 0.0  ;;  %v737_v26 = vpop.f32.mrb[7].mxu0 }
  0xe9   :  { %v1234_v28 = vmax.f32 %v737_v26, 0.0 }
  0xea   :  { %v1360_v29 = vpack.c.bf16 %v1236_v25, %v1235_v24 }
  0xeb   :  { %v1359_v30 = vpack.c.bf16 %v1234_v28, %v1233_v27 }
  0xed   :  { %v2191_v31 = vpop.f32.mrb[8].mxu0 }
  0xee   :  { %v750_v32 = vpop.f32.mrb[9].mxu0  ;;  %v1239_v34 = vmax.f32 %v2191_v31, 0.0 }
  0xef   :  { %v2192_v33 = vpop.f32.mrb[10].mxu0  ;;  %v1237_v37 = vmax.f32 %v750_v32, 0.0 }
  0xf0   :  { %v1240_v35 = vmax.f32 %v2192_v33, 0.0  ;;  %v753_v36 = vpop.f32.mrb[11].mxu0 }
  0xf1   :  { %v1238_v38 = vmax.f32 %v753_v36, 0.0 }
  0xf2   :  { %v2758_v39 = vpack.c.bf16 %v1240_v35, %v1239_v34 }
  0xf3   :  { %v1361_v40 = vpack.c.bf16 %v1238_v38, %v1237_v37 }
  0xf5   :  { %v2195_v41 = vpop.f32.mrb[12].mxu0 }
  0xf6   :  { %v766_v42 = vpop.f32.mrb[13].mxu0  ;;  %v1243_v44 = vmax.f32 %v2195_v41, 0.0  ;;  %v1425_v41 = vcombine.high %v2728_v3, %v2728_v3 }
  0xf7   :  { %v2196_v43 = vpop.f32.mrb[14].mxu0  ;;  %v1241_v47 = vmax.f32 %v766_v42, 0.0 }
  0xf8   :  { %v1244_v45 = vmax.f32 %v2196_v43, 0.0  ;;  %v769_v46 = vpop.f32.mrb[15].mxu0 }
  0xf9   :  { %v1242_v48 = vmax.f32 %v769_v46, 0.0 }
  0xfa   :  { %v2760_v49 = vpack.c.bf16 %v1244_v45, %v1243_v44 }
  0xfb   :  { %v2762_v50 = vpack.c.bf16 %v1242_v48, %v1241_v47 }
  0xfd   :  { %v2199_v51 = vpop.f32.mrb[16].mxu0 }
  0xfe   :  { %v782_v52 = vpop.f32.mrb[17].mxu0  ;;  %v1247_v54 = vmax.f32 %v2199_v51, 0.0 }
  0xff   :  { %v2200_v53 = vpop.f32.mrb[18].mxu0  ;;  %v1245_v57 = vmax.f32 %v782_v52, 0.0 }
 0x100   :  { %v1248_v55 = vmax.f32 %v2200_v53, 0.0  ;;  %v785_v56 = vpop.f32.mrb[19].mxu0  ;;  %v2773_v53 = vrot.slane %v1425_v41, %v2723_v2 }
 0x101   :  { %v1246_v58 = vmax.f32 %v785_v56, 0.0 }
 0x102   :  { %v1366_v59 = vpack.c.bf16 %v1248_v55, %v1247_v54 }
 0x103   :  { %v1365_v60 = vpack.c.bf16 %v1246_v58, %v1245_v57 }
 0x105   :  { %v2203_v61 = vpop.f32.mrb[20].mxu0  ;;  %2071 = vmatprep.subr.bf16.mxu1 %v1365_v60 }
 0x106   :  { %v798_v62 = vpop.f32.mrb[21].mxu0  ;;  %2072 = vmatpush3.bf16.msra.mxu1 %v1357_v20  ;;  %v1251_v0 = vmax.f32 %v2203_v61, 0.0  ;;  %v2291_v20 = vpop.f32.mrb[0].mxu1 }
 0x107   :  { %v2204_v63 = vpop.f32.mrb[22].mxu0  ;;  %2073 = vmatprep.subr.bf16.mxu1 %v1366_v59  ;;  %v1249_v6 = vmax.f32 %v798_v62, 0.0  ;;  %v1339_v22 = vmax.f32 %v2291_v20, 0.0  ;;  %v1150_v23 = vpop.f32.mrb[1].mxu1 }
 0x108   :  { %v1252_v1 = vmax.f32 %v2204_v63, 0.0  ;;  %v801_v5 = vpop.f32.mrb[23].mxu0  ;;  %v1337_v24 = vmax.f32 %v1150_v23, 0.0 }
 0x109   :  { %v1250_v7 = vmax.f32 %v801_v5, 0.0 }
 0x10a   :  { %v1368_v8 = vpack.c.bf16 %v1252_v1, %v1251_v0  ;;  %2074 = vmatpush3.bf16.msra.mxu1 %v1358_v19  ;;  %v2292_v19 = vpop.f32.mrb[2].mxu1 }
 0x10b   :  { %v1367_v9 = vpack.c.bf16 %v1250_v7, %v1249_v6  ;;  %v1340_v26 = vmax.f32 %v2292_v19, 0.0  ;;  %v1153_v27 = vpop.f32.mrb[3].mxu1 }
 0x10c   :  { %v2295_v42 = vpop.f32.mrb[4].mxu1 }
 0x10d   :  { %v2207_v10 = vpop.f32.mrb[24].mxu0  ;;  %2075 = vmatprep.subr.bf16.mxu1 %v1367_v9  ;;  %v2764_v32 = vpack.c.bf16 %v1340_v26, %v1339_v22  ;;  %v1343_v43 = vmax.f32 %v2295_v42, 0.0  ;;  %v1166_v44 = vpop.f32.mrb[5].mxu1 }
 0x10e   :  { %v814_v11 = vpop.f32.mrb[25].mxu0  ;;  %2076 = vmatpush3.bf16.msra.mxu1 %v1359_v30  ;;  %v1255_v13 = vmax.f32 %v2207_v10, 0.0  ;;  %v1338_v30 = vmax.f32 %v1153_v27, 0.0  ;;  %v1341_v45 = vmax.f32 %v1166_v44, 0.0  ;;  %v2296_v46 = vpop.f32.mrb[6].mxu1 }
 0x10f   :  { %v2208_v12 = vpop.f32.mrb[26].mxu0  ;;  %2077 = vmatprep.subr.bf16.mxu1 %v1368_v8  ;;  %v1253_v16 = vmax.f32 %v814_v11, 0.0  ;;  %v1344_v48 = vmax.f32 %v2296_v46, 0.0  ;;  %v1169_v51 = vpop.f32.mrb[7].mxu1 }
 0x110   :  { %v1256_v14 = vmax.f32 %v2208_v12, 0.0  ;;  %v817_v15 = vpop.f32.mrb[27].mxu0  ;;  %v2766_v35 = vpack.c.bf16 %v1338_v30, %v1337_v24  ;;  %v2299_v62 = vpop.f32.mrb[8].mxu1 }
 0x111   :  { %v1254_v17 = vmax.f32 %v817_v15, 0.0  ;;  %v2775_v3 = vpack.c.bf16 %v1344_v48, %v1343_v43  ;;  %v1347_v0 = vmax.f32 %v2299_v62, 0.0  ;;  %v1182_v1 = vpop.f32.mrb[9].mxu1 }
 0x112   :  { %v1370_v18 = vpack.c.bf16 %v1256_v14, %v1255_v13  ;;  %2078 = vmatpush3.bf16.msra.mxu1 %v1360_v29  ;;  %v1345_v5 = vmax.f32 %v1182_v1, 0.0  ;;  %v2300_v6 = vpop.f32.mrb[10].mxu1 }
 0x113   :  { %v1369_v21 = vpack.c.bf16 %v1254_v17, %v1253_v16  ;;  %v1348_v8 = vmax.f32 %v2300_v6, 0.0  ;;  %v1185_v9 = vpop.f32.mrb[11].mxu1 }
 0x114   :  { %v1346_v11 = vmax.f32 %v1185_v9, 0.0 }
 0x115   :  { %v2211_v25 = vpop.f32.mrb[28].mxu0  ;;  %2079 = vmatprep.subr.bf16.mxu1 %v1369_v21  ;;  %v2303_v21 = vpop.f32.mrb[12].mxu1 }
 0x116   :  { %v830_v28 = vpop.f32.mrb[29].mxu0  ;;  %2080 = vmatpush3.bf16.msra.mxu1 %v1361_v40  ;;  %v1259_v33 = vmax.f32 %v2211_v25, 0.0  ;;  %v2789_v16 = vpack.c.bf16 %v1346_v11, %v1345_v5  ;;  %v1198_v23 = vpop.f32.mrb[13].mxu1 }
 0x117   :  { %v2212_v31 = vpop.f32.mrb[30].mxu0  ;;  %2081 = vmatprep.subr.bf16.mxu1 %v1370_v18  ;;  %v1257_v36 = vmax.f32 %v830_v28, 0.0  ;;  %v1349_v24 = vmax.f32 %v1198_v23, 0.0  ;;  %v2304_v19 = vpop.f32.mrb[14].mxu1 }
 0x118   :  { %v1260_v34 = vmax.f32 %v2212_v31, 0.0  ;;  %v833_v29 = vpop.f32.mrb[31].mxu0  ;;  %v1352_v26 = vmax.f32 %v2304_v19, 0.0  ;;  %v1201_v27 = vpop.f32.mrb[15].mxu1 }
 0x119   :  { %v1258_v37 = vmax.f32 %v833_v29, 0.0  ;;  %v1350_v30 = vmax.f32 %v1201_v27, 0.0 }
 0x11a   :  { %v1372_v38 = vpack.c.bf16 %v1260_v34, %v1259_v33  ;;  %2082 = vmatpush3.bf16.msra.mxu1 %v2758_v39  ;;  %v1342_v39 = vmax.f32 %v1169_v51, 0.0 }
 0x11b   :  { %v1371_v40 = vpack.c.bf16 %v1258_v37, %v1257_v36  ;;  %v2797_v37 = vpack.c.bf16 %v1350_v30, %v1349_v24 }
 0x11c   :  { %v2777_v58 = vpack.c.bf16 %v1342_v39, %v1341_v45 }
 0x11d   :  { %v2215_v47 = vpop.f32.mrb[32].mxu0  ;;  %2083 = vmatprep.subr.bf16.mxu1 %v1371_v40  ;;  %v2307_v40 = vpop.f32.mrb[16].mxu1 }
 0x11e   :  { %v846_v52 = vpop.f32.mrb[33].mxu0  ;;  %2084 = vmatpush3.bf16.msra.mxu1 %v2762_v50  ;;  %v1263_v55 = vmax.f32 %v2215_v47, 0.0  ;;  %v1441_v50 = vcombine.high %v2773_v53, %v2773_v53  ;;  %v1355_v44 = vmax.f32 %v2307_v40, 0.0  ;;  %v1214_v45 = vpop.f32.mrb[17].mxu1 }
 0x11f   :  { %v2216_v54 = vpop.f32.mrb[34].mxu0  ;;  %2085 = vmatprep.subr.bf16.mxu1 %v1372_v38  ;;  %v1261_v59 = vmax.f32 %v846_v52, 0.0  ;;  %v1353_v46 = vmax.f32 %v1214_v45, 0.0  ;;  %v2308_v47 = vpop.f32.mrb[18].mxu1 }
 0x120   :  { %v1264_v56 = vmax.f32 %v2216_v54, 0.0  ;;  %v849_v57 = vpop.f32.mrb[35].mxu0  ;;  %v1356_v51 = vmax.f32 %v2308_v47, 0.0  ;;  %v1217_v52 = vpop.f32.mrb[19].mxu1 }
 0x121   :  { %v1262_v60 = vmax.f32 %v849_v57, 0.0  ;;  %v1354_v54 = vmax.f32 %v1217_v52, 0.0 }
 0x122   :  { %v2779_v61 = vpack.c.bf16 %v1264_v56, %v1263_v55  ;;  %2086 = vmatpush3.bf16.msra.mxu1 %v2760_v49  ;;  %v2787_v49 = vpack.c.bf16 %v1348_v8, %v1347_v0  ;;  %v2801_v56 = vpack.c.bf16 %v1356_v51, %v1355_v44 }
 0x123   :  { %v2784_v63 = vpack.c.bf16 %v1262_v60, %v1261_v59 }
 0x125   :  { %v2219_v7 = vpop.f32.mrb[36].mxu0  ;;  %1500 = vmatmul.mubr.bf16.vlgmr.msra.gmra.mrb[20].mxu1 %v2732_v4  ;;  %v1351_v4 = vmax.f32 %v2303_v21, 0.0 }
 0x126   :  { %v862_v10 = vpop.f32.mrb[37].mxu0  ;;  %1539 = vmatprep.mubr.bf16.mxu1 %v1441_v50  ;;  %v1267_v13 = vmax.f32 %v2219_v7, 0.0  ;;  %v2803_v50 = vpack.c.bf16 %v1354_v54, %v1353_v46 }
 0x127   :  { %v2220_v12 = vpop.f32.mrb[38].mxu0  ;;  %v1265_v17 = vmax.f32 %v862_v10, 0.0  ;;  %v2795_v33 = vpack.c.bf16 %v1352_v26, %v1351_v4 }
 0x128   :  { %v1268_v14 = vmax.f32 %v2220_v12, 0.0  ;;  %v865_v15 = vpop.f32.mrb[39].mxu0 }
 0x129   :  { %v1266_v18 = vmax.f32 %v865_v15, 0.0 }
 0x12a   :  { %v2791_v20 = vpack.c.bf16 %v1268_v14, %v1267_v13 }
 0x12b   :  { %v2793_v22 = vpack.c.bf16 %v1266_v18, %v1265_v17 }
 0x12d   :  { %v2223_v25 = vpop.f32.mrb[40].mxu0 }
 0x12e   :  { %v878_v28 = vpop.f32.mrb[41].mxu0  ;;  %v1271_v34 = vmax.f32 %v2223_v25, 0.0 }
 0x12f   :  { %v2224_v31 = vpop.f32.mrb[42].mxu0  ;;  %v1269_v38 = vmax.f32 %v878_v28, 0.0 }
 0x130   :  { %v1272_v29 = vmax.f32 %v2224_v31, 0.0  ;;  %v881_v36 = vpop.f32.mrb[43].mxu0 }
 0x131   :  { %v1270_v41 = vmax.f32 %v881_v36, 0.0 }
 0x132   :  { %v2799_v42 = vpack.c.bf16 %v1272_v29, %v1271_v34 }
 0x133   :  { %v1377_v43 = vpack.c.bf16 %v1270_v41, %v1269_v38 }
 0x135   :  { %v2227_v48 = vpop.f32.mrb[44].mxu0 }
 0x136   :  { %v894_v39 = vpop.f32.mrb[45].mxu0  ;;  %v1275_v57 = vmax.f32 %v2227_v48, 0.0 }
 0x137   :  { %v2228_v55 = vpop.f32.mrb[46].mxu0  ;;  %v1273_v62 = vmax.f32 %v894_v39, 0.0 }
 0x138   :  { %v1276_v59 = vmax.f32 %v2228_v55, 0.0  ;;  %v897_v60 = vpop.f32.mrb[47].mxu0 }
 0x139   :  { %v1274_v0 = vmax.f32 %v897_v60, 0.0 }
 0x13a   :  { %v2805_v1 = vpack.c.bf16 %v1276_v59, %v1275_v57 }
 0x13b   :  { %v1379_v5 = vpack.c.bf16 %v1274_v0, %v1273_v62 }
 0x13d   :  { %v2231_v6 = vpop.f32.mrb[48].mxu0 }
 0x13e   :  { %v910_v7 = vpop.f32.mrb[49].mxu0  ;;  %v1279_v9 = vmax.f32 %v2231_v6, 0.0 }
 0x13f   :  { %v2232_v8 = vpop.f32.mrb[50].mxu0  ;;  %v1277_v12 = vmax.f32 %v910_v7, 0.0 }
 0x140   :  { %v1280_v10 = vmax.f32 %v2232_v8, 0.0  ;;  %v913_v11 = vpop.f32.mrb[51].mxu0 }
 0x141   :  { %v1278_v13 = vmax.f32 %v913_v11, 0.0 }
 0x142   :  { %v1382_v14 = vpack.c.bf16 %v1280_v10, %v1279_v9 }
 0x143   :  { %v1381_v15 = vpack.c.bf16 %v1278_v13, %v1277_v12 }
 0x145   :  { %v2235_v17 = vpop.f32.mrb[52].mxu0  ;;  %2093 = vmatprep.subr.bf16.mxu1 %v1381_v15 }
 0x146   :  { %v926_v18 = vpop.f32.mrb[53].mxu0  ;;  %2094 = vmatpush3.bf16.msra.mxu1 %v2784_v63  ;;  %v1283_v4 = vmax.f32 %v2235_v17, 0.0 }
 0x147   :  { %v2236_v21 = vpop.f32.mrb[54].mxu0  ;;  %2095 = vmatprep.subr.bf16.mxu1 %v1382_v14  ;;  %v1281_v19 = vmax.f32 %v926_v18, 0.0 }
 0x148   :  { %v1284_v23 = vmax.f32 %v2236_v21, 0.0  ;;  %v929_v24 = vpop.f32.mrb[55].mxu0 }
 0x149   :  { %v1282_v25 = vmax.f32 %v929_v24, 0.0 }
 0x14a   :  { %v1384_v26 = vpack.c.bf16 %v1284_v23, %v1283_v4  ;;  %2096 = vmatpush3.bf16.msra.mxu1 %v2779_v61 }
 0x14b   :  { %v1383_v27 = vpack.c.bf16 %v1282_v25, %v1281_v19 }
 0x14d   :  { %v2239_v28 = vpop.f32.mrb[56].mxu0  ;;  %2097 = vmatprep.subr.bf16.mxu1 %v1383_v27 }
 0x14e   :  { %v942_v30 = vpop.f32.mrb[57].mxu0  ;;  %2098 = vmatpush3.bf16.msra.mxu1 %v2793_v22  ;;  %v1287_v34 = vmax.f32 %v2239_v28, 0.0 }
 0x14f   :  { %v2240_v31 = vpop.f32.mrb[58].mxu0  ;;  %2099 = vmatprep.subr.bf16.mxu1 %v1384_v26  ;;  %v1285_v36 = vmax.f32 %v942_v30, 0.0 }
 0x150   :  { %v1288_v63 = vmax.f32 %v2240_v31, 0.0  ;;  %v945_v29 = vpop.f32.mrb[59].mxu0 }
 0x151   :  { %v1286_v38 = vmax.f32 %v945_v29, 0.0 }
 0x152   :  { %v1386_v41 = vpack.c.bf16 %v1288_v63, %v1287_v34  ;;  %2100 = vmatpush3.bf16.msra.mxu1 %v2791_v20  ;;  %v2815_v20 = vld [vmem:[%s2921_s1 + $0x8] sm:$0xff] }
 0x153   :  { %v1385_v40 = vpack.c.bf16 %v1286_v38, %v1285_v36 }
 0x155   :  { %v2243_v44 = vpop.f32.mrb[60].mxu0  ;;  %2101 = vmatprep.subr.bf16.mxu1 %v1385_v40 }
 0x156   :  { %v958_v61 = vpop.f32.mrb[61].mxu0  ;;  %2102 = vmatpush3.bf16.msra.mxu1 %v1377_v43  ;;  %v1291_v46 = vmax.f32 %v2243_v44, 0.0  ;;  %v2819_v43 = vrot.slane %v2815_v20, %v2723_v2 }
 0x157   :  { %v2244_v45 = vpop.f32.mrb[62].mxu0  ;;  %2103 = vmatprep.subr.bf16.mxu1 %v1386_v41  ;;  %v1289_v48 = vmax.f32 %v958_v61, 0.0 }
 0x158   :  { %v1292_v47 = vmax.f32 %v2244_v45, 0.0  ;;  %v961_v22 = vpop.f32.mrb[63].mxu0  ;;  %v1457_v7 = vcombine.high %v2819_v43, %v2819_v43 }
 0x159   :  { %v1290_v51 = vmax.f32 %v961_v22, 0.0 }
 0x15a   :  { %v1388_v52 = vpack.c.bf16 %v1292_v47, %v1291_v46  ;;  %2104 = vmatpush3.bf16.msra.mxu1 %v2799_v42 }
 0x15b   :  { %v1387_v39 = vpack.c.bf16 %v1290_v51, %v1289_v48 }
 0x15d   :  { %v2247_v54 = vpop.f32.mrb[64].mxu0  ;;  %2105 = vmatprep.subr.bf16.mxu1 %v1387_v39 }
 0x15e   :  { %v974_v55 = vpop.f32.mrb[65].mxu0  ;;  %2106 = vmatpush3.bf16.msra.mxu1 %v1379_v5  ;;  %v1295_v59 = vmax.f32 %v2247_v54, 0.0 }
 0x15f   :  { %v2248_v57 = vpop.f32.mrb[66].mxu0  ;;  %2107 = vmatprep.subr.bf16.mxu1 %v1388_v52  ;;  %v1293_v42 = vmax.f32 %v974_v55, 0.0 }
 0x160   :  { %v1296_v60 = vmax.f32 %v2248_v57, 0.0  ;;  %v977_v62 = vpop.f32.mrb[67].mxu0 }
 0x161   :  { %v1294_v0 = vmax.f32 %v977_v62, 0.0 }
 0x162   :  { %v1390_v6 = vpack.c.bf16 %v1296_v60, %v1295_v59  ;;  %2108 = vmatpush3.bf16.msra.mxu1 %v2805_v1 }
 0x163   :  { %v1389_v8 = vpack.c.bf16 %v1294_v0, %v1293_v42 }
 0x165   :  { %v2251_v9 = vpop.f32.mrb[68].mxu0  ;;  %1540 = vmatmul.mubr.bf16.vlgmr.msra.gmra.mrb[24].mxu1 %v2773_v53 }
 0x166   :  { %v990_v5 = vpop.f32.mrb[69].mxu0  ;;  %1579 = vmatprep.mubr.bf16.mxu1 %v1457_v7  ;;  %v1299_v11 = vmax.f32 %v2251_v9, 0.0 }
 0x167   :  { %v2252_v10 = vpop.f32.mrb[70].mxu0  ;;  %v1297_v14 = vmax.f32 %v990_v5, 0.0 }
 0x168   :  { %v1300_v12 = vmax.f32 %v2252_v10, 0.0  ;;  %v993_v13 = vpop.f32.mrb[71].mxu0 }
 0x169   :  { %v1298_v15 = vmax.f32 %v993_v13, 0.0 }
 0x16a   :  { %v1392_v17 = vpack.c.bf16 %v1300_v12, %v1299_v11 }
 0x16b   :  { %v1391_v18 = vpack.c.bf16 %v1298_v15, %v1297_v14 }
 0x16d   :  { %v2255_v21 = vpop.f32.mrb[72].mxu0 }
 0x16e   :  { %v1006_v4 = vpop.f32.mrb[73].mxu0  ;;  %v1303_v23 = vmax.f32 %v2255_v21, 0.0 }
 0x16f   :  { %v2256_v1 = vpop.f32.mrb[74].mxu0  ;;  %v1301_v25 = vmax.f32 %v1006_v4, 0.0 }
 0x170   :  { %v1304_v24 = vmax.f32 %v2256_v1, 0.0  ;;  %v1009_v19 = vpop.f32.mrb[75].mxu0 }
 0x171   :  { %v1302_v26 = vmax.f32 %v1009_v19, 0.0 }
 0x172   :  { %v1394_v27 = vpack.c.bf16 %v1304_v24, %v1303_v23 }
 0x173   :  { %v1393_v53 = vpack.c.bf16 %v1302_v26, %v1301_v25 }
 0x175   :  { %v2259_v28 = vpop.f32.mrb[76].mxu0 }
 0x176   :  { %v1022_v30 = vpop.f32.mrb[77].mxu0  ;;  %v1307_v34 = vmax.f32 %v2259_v28, 0.0 }
 0x177   :  { %v2260_v31 = vpop.f32.mrb[78].mxu0  ;;  %v1305_v36 = vmax.f32 %v1022_v30, 0.0  ;;  %v1442_v30 = vcombine.high %v2815_v20, %v2815_v20 }
 0x178   :  { %v1308_v63 = vmax.f32 %v2260_v31, 0.0  ;;  %v1025_v29 = vpop.f32.mrb[79].mxu0 }
 0x179   :  { %v1306_v38 = vmax.f32 %v1025_v29, 0.0 }
 0x17a   :  { %v2825_v41 = vpack.c.bf16 %v1308_v63, %v1307_v34 }
 0x17b   :  { %v1395_v40 = vpack.c.bf16 %v1306_v38, %v1305_v36 }
 0x17d   :  { %v2263_v44 = vpop.f32.mrb[80].mxu0 }
 0x17e   :  { %v1038_v61 = vpop.f32.mrb[81].mxu0  ;;  %v1311_v46 = vmax.f32 %v2263_v44, 0.0 }
 0x17f   :  { %v2264_v45 = vpop.f32.mrb[82].mxu0  ;;  %v1309_v48 = vmax.f32 %v1038_v61, 0.0 }
 0x180   :  { %v1312_v47 = vmax.f32 %v2264_v45, 0.0  ;;  %v1041_v22 = vpop.f32.mrb[83].mxu0 }
 0x181   :  { %v1310_v51 = vmax.f32 %v1041_v22, 0.0 }
 0x182   :  { %v1398_v52 = vpack.c.bf16 %v1312_v47, %v1311_v46 }
 0x183   :  { %v1397_v39 = vpack.c.bf16 %v1310_v51, %v1309_v48 }
 0x185   :  { %v2267_v54 = vpop.f32.mrb[84].mxu0  ;;  %2115 = vmatprep.subr.bf16.mxu1 %v1397_v39 }
 0x186   :  { %v1054_v55 = vpop.f32.mrb[85].mxu0  ;;  %2116 = vmatpush3.bf16.msra.mxu1 %v1389_v8  ;;  %v1315_v59 = vmax.f32 %v2267_v54, 0.0 }
 0x187   :  { %v2268_v57 = vpop.f32.mrb[86].mxu0  ;;  %2117 = vmatprep.subr.bf16.mxu1 %v1398_v52  ;;  %v1313_v42 = vmax.f32 %v1054_v55, 0.0 }
 0x188   :  { %v1316_v60 = vmax.f32 %v2268_v57, 0.0  ;;  %v1057_v62 = vpop.f32.mrb[87].mxu0 }
 0x189   :  { %v1314_v0 = vmax.f32 %v1057_v62, 0.0 }
 0x18a   :  { %v1400_v7 = vpack.c.bf16 %v1316_v60, %v1315_v59  ;;  %2118 = vmatpush3.bf16.msra.mxu1 %v1390_v6 }
 0x18b   :  { %v1399_v9 = vpack.c.bf16 %v1314_v0, %v1313_v42 }
 0x18d   :  { %v2271_v5 = vpop.f32.mrb[88].mxu0  ;;  %2119 = vmatprep.subr.bf16.mxu1 %v1399_v9 }
 0x18e   :  { %v1070_v10 = vpop.f32.mrb[89].mxu0  ;;  %2120 = vmatpush3.bf16.msra.mxu1 %v1391_v18  ;;  %v1319_v12 = vmax.f32 %v2271_v5, 0.0  ;;  %v2441_v5 = vmov 0.0  }
 0x18f   :  { %v2272_v11 = vpop.f32.mrb[90].mxu0  ;;  %2121 = vmatprep.subr.bf16.mxu1 %v1400_v7  ;;  %v1317_v8 = vmax.f32 %v1070_v10, 0.0  ;;  %v2430_v10 = vld [vmem:[%s2922_s3 + $0x30] sm:$0xff]  }
 0x190   :  { %v1320_v13 = vmax.f32 %v2272_v11, 0.0  ;;  %v1073_v14 = vpop.f32.mrb[91].mxu0  ;;  %v2431_v11 = vld [vmem:[%s2922_s3 + $0x38] sm:$0xff]  }
 0x191   :  { %v1318_v15 = vmax.f32 %v1073_v14, 0.0 }
 0x192   :  { %v1402_v21 = vpack.c.bf16 %v1320_v13, %v1319_v12  ;;  %2122 = vmatpush3.bf16.msra.mxu1 %v1392_v17 }
 0x193   :  { %v1401_v4 = vpack.c.bf16 %v1318_v15, %v1317_v8 }
 0x195   :  { %v2275_v1 = vpop.f32.mrb[92].mxu0  ;;  %2123 = vmatprep.subr.bf16.mxu1 %v1401_v4 }
 0x196   :  { %v1086_v23 = vpop.f32.mrb[93].mxu0  ;;  %2124 = vmatpush3.bf16.msra.mxu1 %v1393_v53  ;;  %v1323_v24 = vmax.f32 %v2275_v1, 0.0  ;;  %v1456_v53 = vrot.slane %v1442_v30, %v2723_v2 }
 0x197   :  { %v2276_v6 = vpop.f32.mrb[94].mxu0  ;;  %2125 = vmatprep.subr.bf16.mxu1 %v1402_v21  ;;  %v1321_v18 = vmax.f32 %v1086_v23, 0.0 }
 0x198   :  { %v1324_v19 = vmax.f32 %v2276_v6, 0.0  ;;  %v1089_v25 = vpop.f32.mrb[95].mxu0 }
 0x199   :  { %v1322_v26 = vmax.f32 %v1089_v25, 0.0 }
 0x19a   :  { %v1404_v28 = vpack.c.bf16 %v1324_v19, %v1323_v24  ;;  %2126 = vmatpush3.bf16.msra.mxu1 %v1394_v27  ;;  %v1458_v27 = vcombine.high %v1456_v53, %v1456_v53 }
 0x19b   :  { %v1403_v31 = vpack.c.bf16 %v1322_v26, %v1321_v18 }
 0x19d   :  { %v2279_v34 = vpop.f32.mrb[96].mxu0  ;;  %2127 = vmatprep.subr.bf16.mxu1 %v1403_v31 }
 0x19e   :  { %v1327_v17 = vmax.f32 %v2279_v34, 0.0  ;;  %v1102_v63 = vpop.f32.mrb[97].mxu0  ;;  %2128 = vmatpush3.bf16.msra.mxu1 %v1395_v40  ;;  %v2432_v34 = vld [vmem:[%s2923_s5] sm:$0xff]  }
 0x19f   :  { %v2280_v29 = vpop.f32.mrb[98].mxu0  ;;  %2129 = vmatprep.subr.bf16.mxu1 %v1404_v28  ;;  %v1325_v44 = vmax.f32 %v1102_v63, 0.0  ;;  %v2433_v63 = vld [vmem:[%s2923_s5 + $0x8] sm:$0xff]  }
 0x1a0   :  { %v1328_v36 = vmax.f32 %v2280_v29, 0.0  ;;  %v1105_v38 = vpop.f32.mrb[99].mxu0  ;;  %v2435_v29 = vld [vmem:[%s2923_s5 + $0x18] sm:$0xff]  }
 0x1a1   :  { %v1326_v61 = vmax.f32 %v1105_v38, 0.0  ;;  %v2437_v38 = vld [vmem:[%s2923_s5 + $0x28] sm:$0xff]  }
 0x1a2   :  { %v1406_v45 = vpack.c.bf16 %v1328_v36, %v1327_v17  ;;  %2130 = vmatpush3.bf16.msra.mxu1 %v2825_v41  ;;  %v2436_v36 = vld [vmem:[%s2923_s5 + $0x20] sm:$0xff]  }
 0x1a3   :  { %v1405_v46 = vpack.c.bf16 %v1326_v61, %v1325_v44  ;;  %2137 = vmatprep.subr.bf16.mxu1 %v2777_v58  ;;  %v2438_v44 = vld [vmem:[%s2923_s5 + $0x30] sm:$0xff]   ;;  %v2439_v61 = vld [vmem:[%s2923_s5 + $0x38] sm:$0xff]  }
 0x1a5   :  { %v2283_v20 = vpop.f32.mrb[100].mxu0  ;;  %1580 = vmatmul.mubr.bf16.vlgmr.msra.gmra.mrb[28].mxu1 %v2819_v43 }
 0x1a6   :  { %v1331_v47 = vmax.f32 %v2283_v20, 0.0  ;;  %v1118_v40 = vpop.f32.mrb[101].mxu0  ;;  %2138 = vmatpush3.bf16.msra.mxu1 %v1405_v46  ;;  %1619 = vmatprep.mubr.bf16.mxu1 %v1458_v27 }
 0x1a7   :  { %v2284_v2 = vpop.f32.mrb[102].mxu0  ;;  %2139 = vmatprep.subr.bf16.mxu1 %v2775_v3  ;;  %v1329_v51 = vmax.f32 %v1118_v40, 0.0 }
 0x1a8   :  { %v1332_v22 = vmax.f32 %v2284_v2, 0.0  ;;  %v1121_v48 = vpop.f32.mrb[103].mxu0 }
 0x1a9   :  { %v1330_v52 = vmax.f32 %v1121_v48, 0.0  ;;  %v1996_v48 = vld [vmem:[%s2925_s6] ss:$0 sm:$0xff] }
 0x1aa   :  { %v1408_v39 = vpack.c.bf16 %v1332_v22, %v1331_v47  ;;  %2140 = vmatpush3.bf16.msra.mxu1 %v1406_v45  ;;  %v1987_v45 = vld [vmem:[%s2924_s4] ss:$0 sm:$0xff] }
 0x1ab   :  { %v1407_v41 = vpack.c.bf16 %v1330_v52, %v1329_v51  ;;  %2141 = vmatprep.subr.bf16.mxu1 %v2789_v16 }
 0x1ad   :  { %v2287_v58 = vpop.f32.mrb[104].mxu0 }
 0x1ae   :  { %v1335_v54 = vmax.f32 %v2287_v58, 0.0  ;;  %v1134_v55 = vpop.f32.mrb[105].mxu0  ;;  %2142 = vmatpush3.bf16.msra.mxu1 %v1407_v41 }
 0x1af   :  { %v2288_v43 = vpop.f32.mrb[106].mxu0  ;;  %2143 = vmatprep.subr.bf16.mxu1 %v2787_v49  ;;  %v1333_v60 = vmax.f32 %v1134_v55, 0.0 }
 0x1b0   :  { %v1336_v57 = vmax.f32 %v2288_v43, 0.0  ;;  %v1137_v59 = vpop.f32.mrb[107].mxu0 }
 0x1b1   :  { %v1334_v3 = vmax.f32 %v1137_v59, 0.0 }
 0x1b2   :  { %v1410_v62 = vpack.c.bf16 %v1336_v57, %v1335_v54  ;;  %2144 = vmatpush3.bf16.msra.mxu1 %v1408_v39 }
 0x1b3   :  { %v1409_v42 = vpack.c.bf16 %v1334_v3, %v1333_v60  ;;  %2145 = vmatprep.subr.bf16.mxu1 %v2797_v37  ;;  %v2427_v37 = vld [vmem:[%s2922_s3 + $0x18] sm:$0xff]  }
 0x1b6   :  { %2146 = vmatpush3.bf16.msra.mxu1 %v1409_v42 }
 0x1b7   :  { %2147 = vmatprep.subr.bf16.mxu1 %v2795_v33  ;;  %v2424_v33 = vld [vmem:[%s2922_s3] sm:$0xff]  }
 0x1ba   :  { %2148 = vmatpush3.bf16.msra.mxu1 %v1410_v62 }
 0x1bb   :  { %2149 = vmatprep.subr.bf16.mxu1 %v2803_v50  ;;  %v2429_v50 = vld [vmem:[%s2922_s3 + $0x28] sm:$0xff]  }
 0x1be   :  { %2150 = vmatpush3.bf16.msra.mxu1 %v2766_v35  ;;  %v2425_v35 = vld [vmem:[%s2922_s3 + $0x8] sm:$0xff]  }
 0x1bf   :  { %2151 = vmatprep.subr.bf16.mxu1 %v2801_v56  ;;  %v2428_v56 = vld [vmem:[%s2922_s3 + $0x20] sm:$0xff]  }
 0x1c2   :  { %2152 = vmatpush3.bf16.msra.mxu1 %v2764_v32  ;;  %v2426_v32 = vld [vmem:[%s2922_s3 + $0x10] sm:$0xff]  }
 0x1c3   :  { %2309 = vmatprep.subr.bf16.mxu1 %v2441_v5 }
 0x1c5   :  { %1620 = vmatmul.mubr.bf16.vlgmr.msra.gmra.mrb[32].mxu1 %v1456_v53  ;;  %v2434_v53 = vld [vmem:[%s2923_s5 + $0x10] sm:$0xff]  }
 0x1c6   :  { %2310 = vmatpush3.bf16.msra.mxu1 %v2424_v33  ;;  %2325 = vmatprep.mubr.msk.bf16.mxu1 %vm2442_vm1, %v2441_v5 }
 0x1c7   :  { %2311 = vmatprep.subr.bf16.mxu1 %v2441_v5 }
 0x1ca   :  { %2312 = vmatpush3.bf16.msra.mxu1 %v2425_v35 }
 0x1cb   :  { %2313 = vmatprep.subr.bf16.mxu1 %v2441_v5 }
 0x1ce   :  { %2314 = vmatpush3.bf16.msra.mxu1 %v2426_v32 }
 0x1cf   :  { %2315 = vmatprep.subr.bf16.mxu1 %v2441_v5 }
 0x1d2   :  { %2316 = vmatpush3.bf16.msra.mxu1 %v2427_v37 }
 0x1d3   :  { %2317 = vmatprep.subr.bf16.mxu1 %v2441_v5 }
 0x1d6   :  { %2318 = vmatpush3.bf16.msra.mxu1 %v2428_v56 }
 0x1d7   :  { %2319 = vmatprep.subr.bf16.mxu1 %v2441_v5 }
 0x1da   :  { %2320 = vmatpush3.bf16.msra.mxu1 %v2429_v50 }
 0x1db   :  { %2321 = vmatprep.subr.bf16.mxu1 %v2441_v5 }
 0x1de   :  { %2322 = vmatpush3.bf16.msra.mxu1 %v2430_v10 }
 0x1df   :  { %2323 = vmatprep.subr.bf16.mxu1 %v2441_v5 }
 0x1e2   :  { %2324 = vmatpush3.bf16.msra.mxu1 %v2431_v11 }
 0x1e3   :  { %2329 = vmatprep.subr.bf16.mxu1 %v2441_v5 }
 0x1f8   :  { %v2087_v49 = vpop.f32.mrb[20].mxu1 }
 0x1f9   :  { %v2088_v16 = vpop.f32.mrb[21].mxu1 }
 0x1fa   :  { %v2089_v0 = vadd.f32 %v2088_v16, %v2087_v49  ;;  %v2090_v7 = vpop.f32.mrb[22].mxu1 }
 0x1fb   :  { %v2091_v9 = vpop.f32.mrb[23].mxu1 }
 0x238   :  { %v2109_v12 = vpop.f32.mrb[24].mxu1 }
 0x239   :  { %v2110_v13 = vpop.f32.mrb[25].mxu1 }
 0x23a   :  { %v2111_v14 = vadd.f32 %v2110_v13, %v2109_v12  ;;  %v2112_v8 = vpop.f32.mrb[26].mxu1 }
 0x23b   :  { %v2113_v15 = vpop.f32.mrb[27].mxu1 }
 0x23c   :  { %v1542_v21 = vadd.f32 %v2111_v14, %v2089_v0 }
 0x278   :  { %v2131_v4 = vpop.f32.mrb[28].mxu1 }
 0x279   :  { %v2132_v1 = vpop.f32.mrb[29].mxu1 }
 0x27a   :  { %v2133_v23 = vadd.f32 %v2132_v1, %v2131_v4  ;;  %v2134_v6 = vpop.f32.mrb[30].mxu1 }
 0x27b   :  { %v2135_v24 = vpop.f32.mrb[31].mxu1 }
 0x27c   :  { %v1582_v19 = vadd.f32 %v2133_v23, %v1542_v21 }
 0x298   :  { %v2153_v25 = vpop.f32.mrb[32].mxu1 }
 0x299   :  { %v2154_v18 = vpop.f32.mrb[33].mxu1 }
 0x29a   :  { %v2155_v26 = vadd.f32 %v2154_v18, %v2153_v25  ;;  %v2156_v28 = vpop.f32.mrb[34].mxu1 }
 0x29b   :  { %v2157_v30 = vpop.f32.mrb[35].mxu1 }
 0x29c   :  { %v1622_v31 = vadd.f32 %v2155_v26, %v1582_v19 }
 0x29e   :  { %v1627_v17 = vpack.c.bf16 %v1622_v31, %v1622_v31 }
 0x2a0   :  { %2326 = vmatmul.mubr.bf16.vlgmr.msra.gmra.mrb[36].mxu1 %v1627_v17 }
 0x2a1   :  { %2330 = vmatpush3.bf16.msra.mxu1 %v2432_v34  ;;  %2345 = vmatprep.mubr.msk.bf16.mxu1 %vm2442_vm1, %v2441_v5 }
 0x2a2   :  { %2331 = vmatprep.subr.bf16.mxu1 %v2441_v5 }
 0x2a5   :  { %2332 = vmatpush3.bf16.msra.mxu1 %v2433_v63 }
 0x2a6   :  { %2333 = vmatprep.subr.bf16.mxu1 %v2441_v5 }
 0x2a9   :  { %2334 = vmatpush3.bf16.msra.mxu1 %v2434_v53 }
 0x2aa   :  { %2335 = vmatprep.subr.bf16.mxu1 %v2441_v5 }
 0x2ad   :  { %2336 = vmatpush3.bf16.msra.mxu1 %v2435_v29 }
 0x2ae   :  { %2337 = vmatprep.subr.bf16.mxu1 %v2441_v5 }
 0x2b1   :  { %2338 = vmatpush3.bf16.msra.mxu1 %v2436_v36 }
 0x2b2   :  { %2339 = vmatprep.subr.bf16.mxu1 %v2441_v5 }
 0x2b5   :  { %2340 = vmatpush3.bf16.msra.mxu1 %v2437_v38 }
 0x2b6   :  { %2341 = vmatprep.subr.bf16.mxu1 %v2441_v5 }
 0x2b9   :  { %2342 = vmatpush3.bf16.msra.mxu1 %v2438_v44 }
 0x2ba   :  { %2343 = vmatprep.subr.bf16.mxu1 %v2441_v5 }
 0x2bd   :  { %2344 = vmatpush3.bf16.msra.mxu1 %v2439_v61 }
 0x373   :  { %v1733_v27 = vpop.f32.mrb[36].mxu1 }
 0x374   :  { %v1734_v46 = vadd.f32 %v1987_v45, %v1733_v27  ;;  %v2327_v20 = vpop.f32.mrb[37].mxu1 }
 0x375   :  { %v1736_v47 = vpop.f32.mrb[38].mxu1 }
 0x376   :  { %v1739_v40 = vmax.f32 %v1734_v46, 0.0  ;;  %v2328_v2 = vpop.f32.mrb[39].mxu1 }
 0x378   :  { %v1740_v22 = vpack.c.bf16 %v1739_v40, %v1739_v40 }
 0x37a   :  { %2346 = vmatmul.mubr.bf16.vlgmr.msra.gmra.mrb[40].mxu1 %v1740_v22 }
 0x44d   :  { %v1846_v51 = vpop.f32.mrb[40].mxu1 }
 0x44e   :  { %v1847_v52 = vadd.f32 %v1996_v48, %v1846_v51  ;;  %v2347_v39 = vpop.f32.mrb[41].mxu1 }
 0x44f   :  { %v1849_v41 = vpop.f32.mrb[42].mxu1 }
 0x450   :  { %1852 = vst [vmem:[%s2926_s7] sm:$0xf] %v1847_v52  ;;  %v2348_v58 = vpop.f32.mrb[43].mxu1 }

</bundles_post_ra>
